<compile_context>
chip_gen: v7x
topology: tpu7x:2x2x1
jax: 0.10.0
libtpu: 0.0.40
codegen_flags: <defaults>
</compile_context>

<pallas_src>
import functools

import jax
import jax.numpy as jnp
from jax.experimental import pallas as pl
from jax.experimental.pallas import tpu as pltpu

LANES = 128


def _round_up(x, m):
    return ((x + m - 1) // m) * m


def _prep_lane_tiles(x, rows_arr):
    """Flatten row-major (native dtype, no upcast) into (rows_arr, 128) tiles.

    Pure reshape (no copy) when numel == rows_arr * 128; otherwise only the
    missing tail is zero-padded.  Zero padding never changes the sums below.
    """
    flat = jnp.ravel(x)
    need = rows_arr * LANES - flat.shape[0]
    if need:
        flat = jnp.concatenate([flat, jnp.zeros((need,), flat.dtype)])
    return flat.reshape(rows_arr, LANES)


def _generator_loss_kernel(yf_ref, y2_ref, cp_ref, fp_ref, out_ref, acc_ref, *,
                           inv_n3, inv_n2, lamda, mu, tile_r, grid_per_split,
                           rows_valid, full_blocks, needs_mask):
    c = pl.program_id(0)                  # megacore split (parallel axis)
    i = pl.program_id(1)                  # streamed row-block (arbitrary axis)
    g = c * grid_per_split + i            # global block index along rows

    @pl.when(i == 0)
    def _init():
        acc_ref[...] = jnp.zeros_like(acc_ref)

    def _accumulate(diff):
        # (tile_r,128) -> (tile_r//8, 8, 128) is tile-aligned (no copy); the
        # axis-0 reduce is pure VPU vadds into the vreg-shaped accumulator.
        acc_ref[...] += jnp.sum(diff.reshape(-1, 8, LANES), axis=0)

    d = jnp.abs(fp_ref[...].astype(jnp.float32) - cp_ref[...].astype(jnp.float32))

    if needs_mask:
        @pl.when(g < full_blocks)                 # hot loop: no iota / mask
        def _full():
            _accumulate(d)

        @pl.when(g >= full_blocks)                # ragged / phantom tail blocks
        def _tail():
            row_ids = jax.lax.broadcasted_iota(jnp.int32, d.shape, 0)
            valid = row_ids < (rows_valid - g * tile_r)   # row-only, int32-safe
            _accumulate(jnp.where(valid, d, 0.0))         # discards stale/NaN
    else:
        _accumulate(d)

    @pl.when(i == pl.num_programs(1) - 1)
    def _finalize():
        # Critic-score tiles are tiny and VMEM-resident (constant index_map).
        loss_3d = -jnp.sum(yf_ref[...].astype(jnp.float32)) * inv_n3
        loss_2d = (-lamda * inv_n2) * jnp.sum(y2_ref[...].astype(jnp.float32))
        cp_part = jnp.sum(acc_ref[...])           # single XLU reduce, once
        row = jax.lax.broadcasted_iota(jnp.int32, (8, LANES), 0)
        col = jax.lax.broadcasted_iota(jnp.int32, (8, LANES), 1)
        tile = jnp.where((row == 0) & (col == 0), cp_part, 0.0)
        tile = jnp.where((row == 0) & (col == 1), loss_3d, tile)
        tile = jnp.where((row == 0) & (col == 2), loss_2d, tile)
        out_ref[...] = tile                       # lane-aligned per-split tile
    del mu  # combine of the two per-core partials happens in the wrapper


def generator_loss_pallas(fake_Y, fake_Y_2d, c_p, fake_p, *, lamda=1.0, mu=1.0,
                          block_rows=2048, num_splits=2):
    """Fused GeneratorLoss: returns (total, loss_3d, loss_2d, c_p_loss)."""
    assert block_rows % 8 == 0
    fake_Y = jnp.asarray(fake_Y)
    fake_Y_2d = jnp.asarray(fake_Y_2d)
    c_p = jnp.asarray(c_p)
    fake_p = jnp.asarray(fake_p)

    n3, n2, n_pts = fake_Y.size, fake_Y_2d.size, c_p.size
    assert n3 > 0 and n2 > 0 and n_pts > 0
    assert fake_p.size == n_pts, "c_p and fake_p must have the same number of elements"

    # Tiny critic-score tiles: kept fully VMEM-resident across the grid.
    yf_rows = _round_up(pl.cdiv(n3, LANES), 8)
    y2_rows = _round_up(pl.cdiv(n2, LANES), 8)
    yf = _prep_lane_tiles(fake_Y, yf_rows)
    y2 = _prep_lane_tiles(fake_Y_2d, y2_rows)

    # Point clouds: streamed, double-buffered, native dtype.
    rows = pl.cdiv(n_pts, LANES)
    if rows <= block_rows:
        rows_arr = _round_up(rows, 8)      # single full-dim block, no mask
        tile_r = rows_arr
    else:
        rows_arr = rows                    # only the <128-elem lane tail padded
        tile_r = block_rows
    cp = _prep_lane_tiles(c_p, rows_arr)
    fp = _prep_lane_tiles(fake_p, rows_arr)

    grid_rows = pl.cdiv(rows_arr, tile_r)
    # 2-way megacore split (v7x). On 1-TC chips it simply serializes; only
    # enabled when the grid is large enough that the possible phantom block
    # and the extra finalize are noise.
    splits = num_splits if (num_splits > 1 and grid_rows >= 4 * num_splits) else 1
    grid_per_split = pl.cdiv(grid_rows, splits)
    total_blocks = splits * grid_per_split
    full_blocks = rows_arr // tile_r
    needs_mask = (total_blocks * tile_r != rows_arr)

    if total_blocks > grid_rows:
        # Clamp phantom block indices so the DMA stays in-bounds; the kernel
        # masks those rows to zero contribution.
        def pts_map(c, i, _g=grid_per_split, _last=grid_rows - 1):
            return (jnp.minimum(c * _g + i, _last), 0)
    else:
        def pts_map(c, i, _g=grid_per_split):
            return (c * _g + i, 0)

    kernel = functools.partial(
        _generator_loss_kernel,
        inv_n3=1.0 / float(n3), inv_n2=1.0 / float(n2),
        lamda=float(lamda), mu=float(mu),
        tile_r=int(tile_r), grid_per_split=int(grid_per_split),
        rows_valid=int(rows_arr), full_blocks=int(full_blocks),
        needs_mask=bool(needs_mask))

    # Default block_rows=2048 keeps the streams at ~4 MiB (safe everywhere,
    # incl. v5e's 16 MiB scoped default). Only set an explicit limit when a
    # larger user-chosen tile would exceed it.
    est_vmem = (2 * tile_r * LANES * (cp.dtype.itemsize + fp.dtype.itemsize)
                + 2 * LANES * (yf_rows * yf.dtype.itemsize + y2_rows * y2.dtype.itemsize)
                + 4 * 8 * LANES * 4)
    vmem_limit = None if est_vmem <= 12 * (1 << 20) else int(min(2 * est_vmem, 48 << 20))

    out = pl.pallas_call(
        kernel,
        out_shape=jax.ShapeDtypeStruct((splits * 8, LANES), jnp.float32),
        grid_spec=pltpu.PrefetchScalarGridSpec(
            num_scalar_prefetch=0,
            grid=(splits, grid_per_split),
            in_specs=[
                pl.BlockSpec((yf_rows, LANES), lambda c, i: (0, 0)),   # resident
                pl.BlockSpec((y2_rows, LANES), lambda c, i: (0, 0)),   # resident
                pl.BlockSpec((tile_r, LANES), pts_map),                # c_p stream
                pl.BlockSpec((tile_r, LANES), pts_map),                # fake_p stream
            ],
            out_specs=pl.BlockSpec((8, LANES), lambda c, i: (c, 0)),
            scratch_shapes=[pltpu.VMEM((8, LANES), jnp.float32)],
        ),
        compiler_params=pltpu.CompilerParams(
            dimension_semantics=("parallel", "arbitrary"),
            vmem_limit_bytes=vmem_limit),
    )(yf, y2, cp, fp)

    parts = out.reshape(splits, 8, LANES)
    cp_loss = jnp.sum(parts[:, 0, 0])          # trivial XLA combine of partials
    loss_3d = parts[0, 0, 1]
    loss_2d = parts[0, 0, 2]
    total = (loss_3d + loss_2d) + mu * cp_loss
    return total, loss_3d, loss_2d, cp_loss


def generator_loss_forward(geometry_loss, c_p_loss, mu=1.0):
    """Module forward(): geometry_loss + mu * c_p_loss (plain JAX scalar FMA)."""
    return jnp.asarray(geometry_loss, jnp.float32) + mu * jnp.asarray(c_p_loss, jnp.float32)


if __name__ == "__main__":
    def reference(fy, fy2, cpv, fpv, lamda, mu):
        l3 = -jnp.mean(fy)
        l2 = -lamda * jnp.mean(fy2)
        lcp = jnp.sum(jnp.abs(fpv - cpv))
        return (l3 + l2) + mu * lcp, l3, l2, lcp

    LAMDA, MU = 1.0, 1.0   # nn.Module defaults
    key = jax.random.PRNGKey(0)
    ks = jax.random.split(key, 4)
    B, N = 2, 64
    fake_Y = jax.random.normal(ks[0], (B, 1), jnp.float32)
    fake_Y_2d = jax.random.normal(ks[1], (B, 1), jnp.float32)
    c_p = jax.random.normal(ks[2], (B, N, 3), jnp.float32)
    fake_p = jax.random.normal(ks[3], (B, N, 3), jnp.float32)

    total, loss_3d, loss_2d, cp_loss = generator_loss_pallas(
        fake_Y, fake_Y_2d, c_p, fake_p, lamda=LAMDA, mu=MU)
    total = jax.block_until_ready(total)

    ref_total, ref_3d, ref_2d, ref_cp = reference(fake_Y, fake_Y_2d, c_p, fake_p, LAMDA, MU)
    assert jnp.allclose(loss_3d, ref_3d, atol=1e-5, rtol=1e-5), (loss_3d, ref_3d)
    assert jnp.allclose(loss_2d, ref_2d, atol=1e-5, rtol=1e-5), (loss_2d, ref_2d)
    assert jnp.allclose(cp_loss, ref_cp, atol=1e-3, rtol=1e-4), (cp_loss, ref_cp)
    assert jnp.allclose(total, ref_total, atol=1e-3, rtol=1e-4), (total, ref_total)

    # Module-style forward() parity on the sub-losses.
    total_api = generator_loss_forward(loss_3d + loss_2d, cp_loss, mu=MU)
    assert jnp.allclose(total_api, ref_total, atol=1e-3, rtol=1e-4), (total_api, ref_total)

    # Small-data stress of the streamed / ragged-tail / 2-split path by forcing
    # a tiny block size (ragged last block + phantom block + megacore split).
    ks2 = jax.random.split(jax.random.PRNGKey(1), 4)
    B2, N2 = 2, 2750                      # 16500 elems -> 129 rows of 128 lanes
    fY = jax.random.normal(ks2[0], (B2, 1), jnp.float32)
    fY2 = jax.random.normal(ks2[1], (B2, 1), jnp.float32)
    cp2 = jax.random.normal(ks2[2], (B2, N2, 3), jnp.float32)
    fp2 = jax.random.normal(ks2[3], (B2, N2, 3), jnp.float32)
    tot2, l3b, l2b, lcpb = generator_loss_pallas(
        fY, fY2, cp2, fp2, lamda=0.5, mu=2.0, block_rows=16)
    tot2 = jax.block_until_ready(tot2)
    rt2, r3b, r2b, rcpb = reference(fY, fY2, cp2, fp2, 0.5, 2.0)
    assert jnp.allclose(l3b, r3b, atol=1e-5, rtol=1e-5), (l3b, r3b)
    assert jnp.allclose(l2b, r2b, atol=1e-5, rtol=1e-5), (l2b, r2b)
    assert jnp.allclose(lcpb, rcpb, atol=1e-2, rtol=1e-4), (lcpb, rcpb)
    assert jnp.allclose(tot2, rt2, atol=1e-2, rtol=1e-4), (tot2, rt2)

    print("KERNEL_OK")
</pallas_src>

<mosaic_0001>
module attributes {stable_mosaic.version = 11 : i64} {
  func.func @_generator_loss_kernel(%arg0: i32, %arg1: i32, %arg2: memref<8x128xf32, #tpu.memory_space<vmem>>, %arg3: memref<8x128xf32, #tpu.memory_space<vmem>>, %arg4: memref<8x128xf32, #tpu.memory_space<vmem>>, %arg5: memref<8x128xf32, #tpu.memory_space<vmem>>, %arg6: memref<8x128xf32, #tpu.memory_space<vmem>>, %arg7: memref<8x128xf32, #tpu.memory_space<vmem>>) attributes {dimension_semantics = [#tpu.dimension_semantics<parallel>, #tpu.dimension_semantics<arbitrary>], iteration_bounds = array<i64: 1, 1>, scalar_prefetch = 0 : i64, scratch_operands = 1 : i64, tpu.core_type = #tpu.core_type<tc>, window_params = [{pipeline_mode = #tpu.pipeline_mode<synchronous>, transform_indices = @transform_0, window_bounds = array<i64: 8, 128>}, {pipeline_mode = #tpu.pipeline_mode<synchronous>, transform_indices = @transform_1, window_bounds = array<i64: 8, 128>}, {transform_indices = @transform_2, window_bounds = array<i64: 8, 128>}, {transform_indices = @transform_3, window_bounds = array<i64: 8, 128>}, {transform_indices = @transform_4, window_bounds = array<i64: 8, 128>}]} {
    %c0_i32 = arith.constant 0 : i32
    %0 = arith.cmpi eq, %arg1, %c0_i32 : i32
    %1 = arith.extui %0 : i1 to i32
    %c0_i32_0 = arith.constant 0 : i32
    %2 = arith.cmpi ne, %1, %c0_i32_0 : i32
    scf.if %2 {
      %cst_10 = arith.constant 0.000000e+00 : f32
      %15 = vector.broadcast %cst_10 : f32 to vector<8x128xf32>
      %c0_11 = arith.constant 0 : index
      %c0_12 = arith.constant 0 : index
      %16 = vector.load %arg7[%c0_11, %c0_12] : memref<8x128xf32, #tpu.memory_space<vmem>>, vector<8x128xf32>
      tpu.vector_store %arg7[%c0_11, %c0_12], %15 {strides = array<i32>} : memref<8x128xf32, #tpu.memory_space<vmem>>, vector<8x128xf32>,
    } else {
    }
    %c0 = arith.constant 0 : index
    %c0_1 = arith.constant 0 : index
    %3 = vector.load %arg5[%c0, %c0_1] : memref<8x128xf32, #tpu.memory_space<vmem>>, vector<8x128xf32>
    %c0_2 = arith.constant 0 : index
    %c0_3 = arith.constant 0 : index
    %4 = vector.load %arg4[%c0_2, %c0_3] : memref<8x128xf32, #tpu.memory_space<vmem>>, vector<8x128xf32>
    %5 = arith.subf %3, %4 : vector<8x128xf32>
    %6 = math.absf %5 : vector<8x128xf32>
    %c0_4 = arith.constant 0 : index
    %c0_5 = arith.constant 0 : index
    %7 = vector.load %arg7[%c0_4, %c0_5] : memref<8x128xf32, #tpu.memory_space<vmem>>, vector<8x128xf32>
    %8 = vector.shape_cast %6 : vector<8x128xf32> to vector<1x8x128xf32>
    %cst = arith.constant dense<0.000000e+00> : vector<8x128xf32>
    %9 = vector.multi_reduction <add>, %8, %cst [0] : vector<1x8x128xf32> to vector<8x128xf32>
    %10 = arith.addf %7, %9 : vector<8x128xf32>
    %c0_6 = arith.constant 0 : index
    %c0_7 = arith.constant 0 : index
    %11 = vector.load %arg7[%c0_6, %c0_7] : memref<8x128xf32, #tpu.memory_space<vmem>>, vector<8x128xf32>
    tpu.vector_store %arg7[%c0_6, %c0_7], %10 {strides = array<i32>} : memref<8x128xf32, #tpu.memory_space<vmem>>, vector<8x128xf32>,
    %c0_i32_8 = arith.constant 0 : i32
    %12 = arith.cmpi eq, %arg1, %c0_i32_8 : i32
    %13 = arith.extui %12 : i1 to i32
    %c0_i32_9 = arith.constant 0 : i32
    %14 = arith.cmpi ne, %13, %c0_i32_9 : i32
    scf.if %14 {
      %c0_10 = arith.constant 0 : index
      %c0_11 = arith.constant 0 : index
      %15 = vector.load %arg2[%c0_10, %c0_11] : memref<8x128xf32, #tpu.memory_space<vmem>>, vector<8x128xf32>
      %16 = vector.shape_cast %15 : vector<8x128xf32> to vector<1x8x128xf32>
      %cst_12 = arith.constant dense<0.000000e+00> : vector<1xf32>
      %17 = vector.multi_reduction <add>, %16, %cst_12 [1, 2] : vector<1x8x128xf32> to vector<1xf32>
      %18 = vector.shape_cast %17 : vector<1xf32> to vector<1x1x1xf32>
      %19 = vector.extract %18[0, 0, 0] : f32 from vector<1x1x1xf32>
      %cst_13 = arith.constant 0.000000e+00 : f32
      %20 = arith.subf %cst_13, %19 : f32
      %cst_14 = arith.constant 5.000000e-01 : f32
      %21 = arith.mulf %20, %cst_14 : f32
      %c0_15 = arith.constant 0 : index
      %c0_16 = arith.constant 0 : index
      %22 = vector.load %arg3[%c0_15, %c0_16] : memref<8x128xf32, #tpu.memory_space<vmem>>, vector<8x128xf32>
      %23 = vector.shape_cast %22 : vector<8x128xf32> to vector<1x8x128xf32>
      %cst_17 = arith.constant dense<0.000000e+00> : vector<1xf32>
      %24 = vector.multi_reduction <add>, %23, %cst_17 [1, 2] : vector<1x8x128xf32> to vector<1xf32>
      %25 = vector.shape_cast %24 : vector<1xf32> to vector<1x1x1xf32>
      %26 = vector.extract %25[0, 0, 0] : f32 from vector<1x1x1xf32>
      %cst_18 = arith.constant -5.000000e-01 : f32
      %27 = arith.mulf %cst_18, %26 : f32
      %c0_19 = arith.constant 0 : index
      %c0_20 = arith.constant 0 : index
      %28 = vector.load %arg7[%c0_19, %c0_20] : memref<8x128xf32, #tpu.memory_space<vmem>>, vector<8x128xf32>
      %29 = vector.shape_cast %28 : vector<8x128xf32> to vector<1x8x128xf32>
      %cst_21 = arith.constant dense<0.000000e+00> : vector<1xf32>
      %30 = vector.multi_reduction <add>, %29, %cst_21 [1, 2] : vector<1x8x128xf32> to vector<1xf32>
      %31 = vector.shape_cast %30 : vector<1xf32> to vector<1x1x1xf32>
      %32 = vector.extract %31[0, 0, 0] : f32 from vector<1x1x1xf32>
      %33 = tpu.iota {dimensions = array<i32: 0>} : vector<8x128xi32>
      %34 = tpu.iota {dimensions = array<i32: 1>} : vector<8x128xi32>
      %c0_i32_22 = arith.constant 0 : i32
      %35 = vector.broadcast %c0_i32_22 : i32 to vector<8x128xi32>
      %36 = arith.cmpi eq, %33, %35 : vector<8x128xi32>
      %c0_i32_23 = arith.constant 0 : i32
      %37 = vector.broadcast %c0_i32_23 : i32 to vector<8x128xi32>
      %38 = arith.cmpi eq, %34, %37 : vector<8x128xi32>
      %39 = arith.andi %36, %38 : vector<8x128xi1>
      %cst_24 = arith.constant 0.000000e+00 : f32
      %40 = vector.broadcast %32 : f32 to vector<8x128xf32>
      %41 = vector.broadcast %cst_24 : f32 to vector<8x128xf32>
      %42 = arith.select %39, %40, %41 : vector<8x128xi1>, vector<8x128xf32>
      %c0_i32_25 = arith.constant 0 : i32
      %43 = vector.broadcast %c0_i32_25 : i32 to vector<8x128xi32>
      %44 = arith.cmpi eq, %33, %43 : vector<8x128xi32>
      %c1_i32 = arith.constant 1 : i32
      %45 = vector.broadcast %c1_i32 : i32 to vector<8x128xi32>
      %46 = arith.cmpi eq, %34, %45 : vector<8x128xi32>
      %47 = arith.andi %44, %46 : vector<8x128xi1>
      %48 = vector.broadcast %21 : f32 to vector<8x128xf32>
      %49 = arith.select %47, %48, %42 : vector<8x128xi1>, vector<8x128xf32>
      %c0_i32_26 = arith.constant 0 : i32
      %50 = vector.broadcast %c0_i32_26 : i32 to vector<8x128xi32>
      %51 = arith.cmpi eq, %33, %50 : vector<8x128xi32>
      %c2_i32 = arith.constant 2 : i32
      %52 = vector.broadcast %c2_i32 : i32 to vector<8x128xi32>
      %53 = arith.cmpi eq, %34, %52 : vector<8x128xi32>
      %54 = arith.andi %51, %53 : vector<8x128xi1>
      %55 = vector.broadcast %27 : f32 to vector<8x128xf32>
      %56 = arith.select %54, %55, %49 : vector<8x128xi1>, vector<8x128xf32>
      %c0_27 = arith.constant 0 : index
      %c0_28 = arith.constant 0 : index
      %57 = vector.load %arg6[%c0_27, %c0_28] : memref<8x128xf32, #tpu.memory_space<vmem>>, vector<8x128xf32>
      tpu.vector_store %arg6[%c0_27, %c0_28], %56 {strides = array<i32>} : memref<8x128xf32, #tpu.memory_space<vmem>>, vector<8x128xf32>,
    } else {
    }
    return
  }
  func.func @transform_0(%arg0: i32, %arg1: i32) -> (i32, i32) {
    %c0_i32 = arith.constant 0 : i32
    %c0_i32_0 = arith.constant 0 : i32
    %c0_i32_1 = arith.constant 0 : i32
    return %c0_i32, %c0_i32_0 : i32, i32
  }
  func.func @transform_1(%arg0: i32, %arg1: i32) -> (i32, i32) {
    %c0_i32 = arith.constant 0 : i32
    %c0_i32_0 = arith.constant 0 : i32
    %c0_i32_1 = arith.constant 0 : i32
    return %c0_i32, %c0_i32_0 : i32, i32
  }
  func.func @transform_2(%arg0: i32, %arg1: i32) -> (i32, i32) {
    %c1_i32 = arith.constant 1 : i32
    %0 = arith.muli %arg0, %c1_i32 : i32
    %1 = arith.addi %0, %arg1 : i32
    %c0_i32 = arith.constant 0 : i32
    %c0_i32_0 = arith.constant 0 : i32
    return %1, %c0_i32 : i32, i32
  }
  func.func @transform_3(%arg0: i32, %arg1: i32) -> (i32, i32) {
    %c1_i32 = arith.constant 1 : i32
    %0 = arith.muli %arg0, %c1_i32 : i32
    %1 = arith.addi %0, %arg1 : i32
    %c0_i32 = arith.constant 0 : i32
    %c0_i32_0 = arith.constant 0 : i32
    return %1, %c0_i32 : i32, i32
  }
  func.func @transform_4(%arg0: i32, %arg1: i32) -> (i32, i32) {
    %c0_i32 = arith.constant 0 : i32
    %c0_i32_0 = arith.constant 0 : i32
    return %arg0, %c0_i32 : i32, i32
  }
}

</mosaic_0001>

<bundles_post_ra>
// kernel: tpu_custom_call.1
= control target key start
LH: loop header
LB: loop body
LE: loop exit
PB: predicated region body
PF: predicated region fallthrough
CT: control target
= control target key end

     0   :  { %9 = vsyncpa [#allocation4], 0  ;;  %s347_s0 = inlined_call_operand.hbm [shape: f32[8,128], index: 0, kind: input, shape index: {}]   ;;  %s348_s1 = inlined_call_operand.hbm [shape: f32[8,128], index: 1, kind: input, shape index: {}]   ;;  %s349_s2 = inlined_call_operand.hbm [shape: f32[8,128], index: 2, kind: input, shape index: {}]   ;;  %s350_s3 = inlined_call_operand.vmem [shape: f32[8,128], index: 3, kind: input, shape index: {}]   ;;  %s351_s4 = inlined_call_operand.hbm [shape: f32[8,128], index: 4, kind: output, shape index: {}]  }
   0x1   :  { %10 = vsyncpa [#allocation7], 0 }
   0x2   :  { %11 = vsyncpa [#allocation5], 0  ;;  %s267_s15 = smov [#allocation6]   ;;  %s268_s17 = smov [#allocation3]  }
   0x3   :  { %s28_s16 = sshll.u32 %s267_s15, 4  ;;  %s18_s18 = sshll.u32 %s268_s17, 4  ;;  %s29_s16 = int_to_ptr.vmem [resolvable:$true] %s28_s16  ;;  %s19_s18 = int_to_ptr.vmem [resolvable:$true] %s18_s18 }
   0x4   :  { %s173_s21 = scalar_lea.hbm %s348_s1, 128 }
   0x5   :  { %p174_p0 = scmp.ne.s32.totalorder %s348_s1, %s173_s21  ;;  %p177_p1 = scmp.lt.u32.totalorder %s173_s21, %s348_s1 }
   0x7   :  { %p179_p2 = pnand %p177_p1, %p174_p0 }
   0x9   :  { %182 = shalt.err (!%p179_p2)
}
   0xa   :  { %s183_s26 = scalar_lea.vmem %s29_s16, 128  ;;  %p188_p4 = scmp.lt.s32.totalorder %s29_s16, %s29_s16 }
   0xb   :  { %p184_p3 = scmp.ne.s32.totalorder %s29_s16, %s183_s26  ;;  %p189_p5 = scmp.lt.s32.totalorder %s183_s26, %s183_s26 }
   0xd   :  { %p190_p6 = por %p189_p5, %p188_p4 }
   0xf   :  { %p191_p7 = pnand %p190_p6, %p184_p3 }
  0x11   :  { %194 = shalt.err (!%p191_p7)
}
  0x12   :  { %31 = dma.hbm_to_vmem [thread:$0]  %s348_s1, 128, %s29_s16, [#allocation7]  }
  0x13   :  { %s195_s5 = scalar_lea.hbm %s347_s0, 128 }
  0x14   :  { %p196_p8 = scmp.ne.s32.totalorder %s347_s0, %s195_s5  ;;  %p199_p9 = scmp.lt.u32.totalorder %s195_s5, %s347_s0 }
  0x16   :  { %p201_p10 = pnand %p199_p9, %p196_p8 }
  0x18   :  { %204 = shalt.err (!%p201_p10)
}
  0x19   :  { %s205_s10 = scalar_lea.vmem %s19_s18, 128  ;;  %p210_p12 = scmp.lt.s32.totalorder %s19_s18, %s19_s18 }
  0x1a   :  { %p206_p11 = scmp.ne.s32.totalorder %s19_s18, %s205_s10  ;;  %p211_p13 = scmp.lt.s32.totalorder %s205_s10, %s205_s10 }
  0x1c   :  { %p212_p0 = por %p211_p13, %p210_p12 }
  0x1e   :  { %p213_p1 = pnand %p212_p0, %p206_p11 }
  0x20   :  { %216 = shalt.err (!%p213_p1)
}
  0x21   :  { %21 = dma.hbm_to_vmem [thread:$0]  %s347_s0, 128, %s19_s18, [#allocation4]  }
  0x22   :  { %s269_s12 = smov [#allocation8]   ;;  %s217_s16 = scalar_lea.hbm %s349_s2, 128 }
  0x23   :  { %s41_s13 = sshll.u32 %s269_s12, 4  ;;  %p218_p2 = scmp.ne.s32.totalorder %s349_s2, %s217_s16  ;;  %s42_s13 = int_to_ptr.vmem [resolvable:$true] %s41_s13 }
  0x24   :  { %p221_p3 = scmp.lt.u32.totalorder %s217_s16, %s349_s2 }
  0x26   :  { %p223_p4 = pnand %p221_p3, %p218_p2 }
  0x28   :  { %226 = shalt.err (!%p223_p4)
}
  0x29   :  { %s227_s22 = scalar_lea.vmem %s42_s13, 128  ;;  %p232_p6 = scmp.lt.s32.totalorder %s42_s13, %s42_s13 }
  0x2a   :  { %p228_p5 = scmp.ne.s32.totalorder %s42_s13, %s227_s22  ;;  %p233_p7 = scmp.lt.s32.totalorder %s227_s22, %s227_s22 }
  0x2c   :  { %p234_p8 = por %p233_p7, %p232_p6 }
  0x2e   :  { %p235_p9 = pnand %p234_p8, %p228_p5 }
  0x30   :  { %238 = shalt.err (!%p235_p9)
}
  0x31   :  { %44 = dma.hbm_to_vmem [thread:$0]  %s349_s2, 128, %s42_s13, [#allocation7]  }
  0x32   :  { %261 = dma.done.wait [#allocation4], 128  }
  0x33   :  { %262 = vsyncadd [#allocation4], 4294967168 }
  0x34   :  { %263 = dma.done.wait [#allocation7], 256  }
  0x35   :  { %264 = vsyncadd [#allocation7], 4294967040  ;;  %v90_v0 = vld [vmem:[#allocation3] sm:$0xff]  ;;  %v80_v2 = vld [vmem:[#allocation8] sm:$0xff]  ;;  %v123_v27 = vlaneseq  ;;  %s270_s27 = smov [#allocation9]  }
  0x36   :  { %v79_v1 = vld [vmem:[%s350_s3] sm:$0xff]  ;;  %91 = vadd.xlane.f32.xlu0 %v90_v0  ;;  %v102_v3 = vld [vmem:[#allocation6] sm:$0xff]  ;;  %s147_s28 = sshll.u32 %s270_s27, 4  ;;  %s148_s28 = int_to_ptr.vmem [resolvable:$true] %s147_s28 }
  0x37   :  { %v81_v4 = vsub.f32 %v79_v1, %v80_v2  ;;  %v124_v28 = vshrl.u32 %v123_v27, 7  ;;  %v126_v29 = vand.u32 127, %v123_v27  ;;  %s239_s5 = scalar_lea.vmem %s148_s28, 128  ;;  %p244_p11 = scmp.lt.s32.totalorder %s148_s28, %s148_s28 }
  0x38   :  { %p240_p10 = scmp.ne.s32.totalorder %s148_s28, %s239_s5  ;;  %p245_p12 = scmp.lt.s32.totalorder %s239_s5, %s239_s5 }
  0x39   :  { %v82_v5 = vand.u32 2147483647, %v81_v4  ;;  %vm127_vm0 = vcmp.eq.s32.totalorder %v124_v28, 0  ;;  %vm128_vm1 = vcmp.eq.s32.totalorder %v126_v29, 0  ;;  %vm132_vm2 = vcmp.eq.s32.totalorder %v126_v29, 1 }
  0x3a   :  { %103 = vadd.xlane.f32.xlu0 %v102_v3  ;;  %vm136_vm3 = vcmp.eq.s32.totalorder %v126_v29, 2  ;;  %vm129_vm4 = vmand %vm127_vm0, %vm128_vm1  ;;  %p246_p13 = por %p245_p12, %p244_p11 }
  0x3b   :  { %114 = vadd.xlane.f32.xlu1 %v82_v5  ;;  %vm133_vm5 = vmand %vm127_vm0, %vm132_vm2 }
  0x3c   :  { %vm137_vm6 = vmand %vm127_vm0, %vm136_vm3  ;;  %p247_p0 = pnand %p246_p13, %p240_p10 }
  0xc3   :  { %v92_v6 = vpop.xlane.xlu0 %91 }
  0xc4   :  { %v93_v7 = vrot.slane %v92_v6, 4 }
  0xc6   :  { %v94_v8 = vadd.f32 %v93_v7, %v92_v6 }
  0xc7   :  { %v104_v9 = vpop.xlane.xlu0 %103 }
  0xc8   :  { %v95_v10 = vrot.slane %v94_v8, 2  ;;  %v105_v11 = vrot.slane %v104_v9, 4  ;;  %v115_v12 = vpop.xlane.xlu1 %114 }
  0xc9   :  { %v116_v13 = vrot.slane %v115_v12, 4 }
  0xca   :  { %v106_v14 = vadd.f32 %v105_v11, %v104_v9  ;;  %v96_v15 = vadd.f32 %v95_v10, %v94_v8 }
  0xcb   :  { %v117_v16 = vadd.f32 %v116_v13, %v115_v12 }
  0xcc   :  { %v107_v17 = vrot.slane %v106_v14, 2  ;;  %v97_v18 = vrot.slane %v96_v15, 1 }
  0xcd   :  { %v118_v19 = vrot.slane %v117_v16, 2 }
  0xce   :  { %v108_v20 = vadd.f32 %v107_v17, %v106_v14  ;;  %v98_v21 = vadd.f32 %v97_v18, %v96_v15 }
  0xcf   :  { %v119_v22 = vadd.f32 %v118_v19, %v117_v16 }
  0xd0   :  { %163 = vpush %v98_v21  ;;  %v109_v23 = vrot.slane %v108_v20, 1 }
  0xd1   :  { %v120_v24 = vrot.slane %v119_v22, 1 }
  0xd2   :  { %v110_v25 = vadd.f32 %v109_v23, %v108_v20 }
  0xd3   :  { %v121_v26 = vadd.f32 %v120_v24, %v119_v22 }
  0xd4   :  { %165 = vpush %v110_v25 }
  0xd5   :  { %167 = vpush %v121_v26 }
 0x101   :  { %s164_s2 = spop %163 }
 0x102   :  { %s100_s3 = ssub.f32 0.0, %s164_s2 }
 0x104   :  { %s101_s25 = smul.f32 0.5, %s100_s3 }
 0x105   :  { %s166_s26 = spop %165 }
 0x106   :  { %v134_v30 = vstv %s101_s25  ;;  %s112_s29 = smul.f32 -0.5, %s166_s26  ;;  %s168_s30 = spop %167 }
 0x107   :  { %v130_v31 = vstv %s168_s30 }
 0x108   :  { %v138_v32 = vstv %s112_s29  ;;  %v131_v33 = vsel %vm129_vm4, %v130_v31, 0.0 }
 0x109   :  { %v135_v34 = vsel %vm133_vm5, %v134_v30, %v131_v33 }
 0x10a   :  { %v139_v35 = vsel %vm137_vm6, %v138_v32, %v135_v34 }
 0x10b   :  { %140 = vst [vmem:[#allocation9] sm:$0xff] %v139_v35 }
 0x10c   :  { %250 = shalt.err (!%p247_p0)
}
 0x10d   :  { %s251_s8 = scalar_lea.hbm %s351_s4, 128 }
 0x10e   :  { %p252_p1 = scmp.ne.s32.totalorder %s351_s4, %s251_s8  ;;  %p255_p2 = scmp.lt.u32.totalorder %s251_s8, %s351_s4 }
 0x110   :  { %p257_p3 = pnand %p255_p2, %p252_p1 }
 0x112   :  { %260 = shalt.err (!%p257_p3)
}
 0x113   :  { %150 = dma.vmem_to_hbm [thread:$0]  %s148_s28, 128, %s351_s4, [#allocation5]  }
 0x114   :  { %265 = dma.done.wait [#allocation5], 128  }
 0x115   :  { %266 = vsyncadd [#allocation5], 4294967168 }
 0x116   :  { %154 = vsyncpa [#allocation4], 1 }
 0x117   :  { %155 = vsyncpa [#allocation7], 1 }
 0x118   :  { %156 = vsyncpa [#allocation5], 1 }

</bundles_post_ra>
